<compile_context>
chip_gen: v7x
topology: tpu7x:2x2x1
jax: 0.10.0
libtpu: 0.0.40
codegen_flags: <defaults>
</compile_context>

<pallas_src>
import jax
import jax.numpy as jnp
from jax.experimental import pallas as pl
from jax.experimental.pallas import tpu as pltpu


def _cdiv(a, b):
    return -(-a // b)


def _make_kernel(d, tk, grid_k, resident_w):
    """Build the kernel with the static tiling configuration baked in."""
    mask_tail = (grid_k * tk != d)  # feature tail: mask stale VMEM columns

    def kernel(x_ref, w_ref, b_ref, o_ref, acc_ref):
        # x_ref: (TB, TK) VMEM     w_ref: (K_pad, 1) or (TK, 1) VMEM
        # b_ref: (1, 1) SMEM       o_ref: (TB, 1) VMEM
        # acc_ref: (TB, 1) f32 VMEM scratch, carried across the k axis
        k = pl.program_id(1)

        @pl.when(k == 0)
        def _():
            acc_ref[...] = jnp.zeros_like(acc_ref)

        xt = x_ref[...]
        if mask_tail:
            # Partial last K tile: columns >= D hold stale VMEM data (possibly
            # NaN/Inf); zero them explicitly rather than relying on 0-padded w
            # (0 * NaN == NaN).
            col = k * tk + jax.lax.broadcasted_iota(jnp.int32, xt.shape, 1)
            xt = jnp.where(col < d, xt, jnp.zeros_like(xt))

        if resident_w:
            if grid_k == 1:
                wt = w_ref[...]
            else:
                start = pl.multiple_of(k * tk, 128)
                wt = w_ref[pl.ds(start, tk), :]
        else:
            wt = w_ref[...]

        acc_ref[...] += jnp.dot(xt, wt, preferred_element_type=jnp.float32)

        @pl.when(k == grid_k - 1)
        def _():
            z = acc_ref[...] + b_ref[0, 0]
            # exact sigmoid: 0.5 * (tanh(z/2) + 1) — one EUP op, no overflow
            o_ref[...] = (0.5 * (jnp.tanh(0.5 * z) + 1.0)).astype(o_ref.dtype)

    return kernel


def _vmem_capacity_bytes():
    try:
        return int(pltpu.get_tpu_info().vmem_capacity_bytes)
    except Exception:
        return 64 * 1024 * 1024  # conservative fallback: v7x VMEM per TensorCore


def logistic_regression_forward(x, w, b):
    """x: (B, D), w: (D,) (out_dims=1, squeezed), b: (1,) -> (B,) probabilities."""
    B, D = x.shape
    assert w.shape == (D,) and b.shape == (1,)

    # ---- generation-specific budgets ------------------------------------
    vmem_cap = _vmem_capacity_bytes()
    if vmem_cap >= 100 * 1024 * 1024:   # v5e / v6e: 128 MiB physical VMEM
        tk_cap = 4096
        x_budget = 48 * 1024 * 1024     # for the (up to) triple-buffered X tiles
        vmem_limit = 96 * 1024 * 1024
    else:                               # v7x: 64 MiB physical VMEM per TC
        tk_cap = 2048
        x_budget = 24 * 1024 * 1024
        vmem_limit = 48 * 1024 * 1024

    # ---- feature (reduction) tiling: never pad X -------------------------
    if D <= tk_cap:
        TK, grid_k = D, 1               # single reduction step; TK == full dim
    else:
        TK = tk_cap                     # multiple of 128; last tile may be partial
        grid_k = _cdiv(D, TK)
    K_pad = grid_k * TK

    # ---- batch tiling: multiple of 8 (or == B); partial last tile is fine ----
    n_buf = 3
    tb_budget = max(8, (x_budget // (n_buf * TK * 4)) // 8 * 8)
    if B <= 8:
        TB = B
    else:
        TB = min(1024, (B // 8) * 8, tb_budget)
    grid_b = _cdiv(B, TB)

    # ---- parameters: only w (tiny) is ever padded; X goes in untouched ----
    w2 = w.reshape(D, 1).astype(x.dtype)
    if K_pad != D:
        w2 = jnp.pad(w2, ((0, K_pad - D), (0, 0)))
    b2 = b.reshape(1, 1).astype(jnp.float32)

    # w resident in VMEM (fetched once) when small; a (K, 1) f32 column costs
    # ~512 B/row of VMEM, so cap residency at ~4 MiB, else stream per k-step.
    resident_w = K_pad * 512 <= 4 * 1024 * 1024
    if resident_w:
        w_spec = pl.BlockSpec((K_pad, 1), lambda i, k: (0, 0))
    else:
        w_spec = pl.BlockSpec((TK, 1), lambda i, k: (k, 0))

    # Deepen the X pipeline to 3 buffers when the grid is long enough for the
    # extra depth to hide DMA issue latency / per-step overhead.
    x_spec_kwargs = {}
    if grid_b * grid_k >= 3:
        x_spec_kwargs["pipeline_mode"] = pl.Buffered(n_buf)
    x_spec = pl.BlockSpec((TB, TK), lambda i, k: (i, k), **x_spec_kwargs)

    kernel = _make_kernel(D, TK, grid_k, resident_w)

    out = pl.pallas_call(
        kernel,
        out_shape=jax.ShapeDtypeStruct((B, 1), x.dtype),
        grid_spec=pltpu.PrefetchScalarGridSpec(
            num_scalar_prefetch=0,
            grid=(grid_b, grid_k),
            in_specs=[
                x_spec,                                          # X: streamed tiles
                w_spec,                                          # w: resident or per-k
                pl.BlockSpec((1, 1), lambda i, k: (0, 0),        # b: scalar in SMEM
                             memory_space=pltpu.MemorySpace.SMEM),
            ],
            out_specs=pl.BlockSpec((TB, 1), lambda i, k: (i, 0)),
            scratch_shapes=[pltpu.VMEM((TB, 1), jnp.float32)],
        ),
        compiler_params=pltpu.CompilerParams(
            # Batch axis parallel (v7x megacore sharding; verify with xprof that
            # both TensorCores are used, else switch to CORE_PARALLEL); the
            # reduction axis is last and "arbitrary" for the carried accumulator.
            dimension_semantics=("parallel", "arbitrary"),
            vmem_limit_bytes=vmem_limit,
        ),
        cost_estimate=pl.CostEstimate(
            flops=2 * B * D,
            transcendentals=B,
            bytes_accessed=4 * (B * D + D + B + 1),
        ),
    )(x, w2, b2)

    # PyTorch (out_dims=1): (B, D) @ (D,) + (1,) -> (B,); sigmoid keeps shape.
    return out.reshape(B)


if __name__ == "__main__":
    key = jax.random.PRNGKey(0)
    k_x, k_w, k_b = jax.random.split(key, 3)

    batch, in_dims, out_dims = 8, 32, 1  # module default out_dims=1

    x = jax.random.normal(k_x, (batch, in_dims), dtype=jnp.float32)
    # torch.randn(in_dims, out_dims).squeeze() with out_dims=1 -> shape (in_dims,)
    w = jax.random.normal(k_w, (in_dims, out_dims), dtype=jnp.float32).squeeze()
    b = jax.random.normal(k_b, (out_dims,), dtype=jnp.float32)

    y = logistic_regression_forward(x, w, b)
    jax.block_until_ready(y)

    # High-precision reference. The tolerance accounts for matmul pass-precision
    # differences between the in-kernel dot and XLA (default-precision f32
    # matmuls may use bf16 MXU passes); the kernel accumulates in f32 and uses
    # an exact tanh-based sigmoid (no approx reciprocal).
    z_ref = jnp.dot(x, w, precision=jax.lax.Precision.HIGHEST) + b
    y_ref = jax.nn.sigmoid(z_ref)
    assert y.shape == (batch,), y.shape
    assert bool(jnp.all(jnp.isfinite(y))), y
    assert jnp.allclose(y, y_ref, atol=1e-2, rtol=1e-2), (y, y_ref)

    print("KERNEL_OK")
</pallas_src>

<mosaic_0001>
module attributes {stable_mosaic.version = 11 : i64} {
  func.func @kernel(%arg0: i32, %arg1: i32, %arg2: memref<8x32xf32, #tpu.memory_space<vmem>>, %arg3: memref<32x1xf32, #tpu.memory_space<vmem>>, %arg4: memref<1x1xf32, #tpu.memory_space<smem>>, %arg5: memref<8x1xf32, #tpu.memory_space<vmem>>, %arg6: memref<8x1xf32, #tpu.memory_space<vmem>>) attributes {dimension_semantics = [#tpu.dimension_semantics<parallel>, #tpu.dimension_semantics<arbitrary>], iteration_bounds = array<i64: 1, 1>, scalar_prefetch = 0 : i64, scratch_operands = 1 : i64, tpu.core_type = #tpu.core_type<tc>, window_params = [{transform_indices = @transform_0, window_bounds = array<i64: 8, 32>}, {pipeline_mode = #tpu.pipeline_mode<synchronous>, transform_indices = @transform_1, window_bounds = array<i64: 32, 1>}, {transform_indices = @transform_2, window_bounds = array<i64: 1, 1>}, {transform_indices = @transform_3, window_bounds = array<i64: 8, 1>}]} {
    %c0_i32 = arith.constant 0 : i32
    %0 = arith.cmpi eq, %arg1, %c0_i32 : i32
    %1 = arith.extui %0 : i1 to i32
    %c0_i32_0 = arith.constant 0 : i32
    %2 = arith.cmpi ne, %1, %c0_i32_0 : i32
    scf.if %2 {
      %cst_10 = arith.constant 0.000000e+00 : f32
      %12 = vector.broadcast %cst_10 : f32 to vector<8x1xf32>
      %c0_11 = arith.constant 0 : index
      %c0_12 = arith.constant 0 : index
      %13 = vector.load %arg6[%c0_11, %c0_12] : memref<8x1xf32, #tpu.memory_space<vmem>>, vector<8x1xf32>
      tpu.vector_store %arg6[%c0_11, %c0_12], %12 {strides = array<i32>} : memref<8x1xf32, #tpu.memory_space<vmem>>, vector<8x1xf32>,
    } else {
    }
    %c0 = arith.constant 0 : index
    %c0_1 = arith.constant 0 : index
    %3 = vector.load %arg2[%c0, %c0_1] : memref<8x32xf32, #tpu.memory_space<vmem>>, vector<8x32xf32>
    %c0_2 = arith.constant 0 : index
    %c0_3 = arith.constant 0 : index
    %4 = vector.load %arg3[%c0_2, %c0_3] : memref<32x1xf32, #tpu.memory_space<vmem>>, vector<32x1xf32>
    %c0_4 = arith.constant 0 : index
    %c0_5 = arith.constant 0 : index
    %5 = vector.load %arg6[%c0_4, %c0_5] : memref<8x1xf32, #tpu.memory_space<vmem>>, vector<8x1xf32>
    %cst = arith.constant dense<0.000000e+00> : vector<8x1xf32>
    %6 = tpu.matmul %3, %4, %cst {dimension_numbers = #tpu.dot_dimension_numbers<[1], [0], [0], [1], [0, 0, 1, 1], [], []>} : vector<8x32xf32>, vector<32x1xf32>, vector<8x1xf32> -> vector<8x1xf32>
    %7 = arith.addf %5, %6 : vector<8x1xf32>
    %c0_6 = arith.constant 0 : index
    %c0_7 = arith.constant 0 : index
    %8 = vector.load %arg6[%c0_6, %c0_7] : memref<8x1xf32, #tpu.memory_space<vmem>>, vector<8x1xf32>
    tpu.vector_store %arg6[%c0_6, %c0_7], %7 {strides = array<i32>} : memref<8x1xf32, #tpu.memory_space<vmem>>, vector<8x1xf32>,
    %c0_i32_8 = arith.constant 0 : i32
    %9 = arith.cmpi eq, %arg1, %c0_i32_8 : i32
    %10 = arith.extui %9 : i1 to i32
    %c0_i32_9 = arith.constant 0 : i32
    %11 = arith.cmpi ne, %10, %c0_i32_9 : i32
    scf.if %11 {
      %c0_10 = arith.constant 0 : index
      %c0_11 = arith.constant 0 : index
      %12 = vector.load %arg6[%c0_10, %c0_11] : memref<8x1xf32, #tpu.memory_space<vmem>>, vector<8x1xf32>
      %c0_12 = arith.constant 0 : index
      %c0_13 = arith.constant 0 : index
      %13 = memref.load %arg4[%c0_12, %c0_13] : memref<1x1xf32, #tpu.memory_space<smem>>
      %14 = vector.broadcast %13 : f32 to vector<8x1xf32>
      %15 = arith.addf %12, %14 : vector<8x1xf32>
      %cst_14 = arith.constant 5.000000e-01 : f32
      %16 = vector.broadcast %cst_14 : f32 to vector<8x1xf32>
      %17 = arith.mulf %16, %15 : vector<8x1xf32>
      %18 = math.tanh %17 : vector<8x1xf32>
      %cst_15 = arith.constant 1.000000e+00 : f32
      %19 = vector.broadcast %cst_15 : f32 to vector<8x1xf32>
      %20 = arith.addf %18, %19 : vector<8x1xf32>
      %cst_16 = arith.constant 5.000000e-01 : f32
      %21 = vector.broadcast %cst_16 : f32 to vector<8x1xf32>
      %22 = arith.mulf %21, %20 : vector<8x1xf32>
      %c0_17 = arith.constant 0 : index
      %c0_18 = arith.constant 0 : index
      %23 = vector.load %arg5[%c0_17, %c0_18] : memref<8x1xf32, #tpu.memory_space<vmem>>, vector<8x1xf32>
      tpu.vector_store %arg5[%c0_17, %c0_18], %22 {strides = array<i32>} : memref<8x1xf32, #tpu.memory_space<vmem>>, vector<8x1xf32>,
    } else {
    }
    return
  }
  func.func @transform_0(%arg0: i32, %arg1: i32) -> (i32, i32) {
    %c0_i32 = arith.constant 0 : i32
    return %arg0, %arg1 : i32, i32
  }
  func.func @transform_1(%arg0: i32, %arg1: i32) -> (i32, i32) {
    %c0_i32 = arith.constant 0 : i32
    %c0_i32_0 = arith.constant 0 : i32
    %c0_i32_1 = arith.constant 0 : i32
    return %c0_i32, %c0_i32_0 : i32, i32
  }
  func.func @transform_2(%arg0: i32, %arg1: i32) -> (i32, i32) {
    %c0_i32 = arith.constant 0 : i32
    %c0_i32_0 = arith.constant 0 : i32
    %c0_i32_1 = arith.constant 0 : i32
    return %c0_i32, %c0_i32_0 : i32, i32
  }
  func.func @transform_3(%arg0: i32, %arg1: i32) -> (i32, i32) {
    %c0_i32 = arith.constant 0 : i32
    %c0_i32_0 = arith.constant 0 : i32
    return %arg0, %c0_i32 : i32, i32
  }
}

</mosaic_0001>

<bundles_post_ra>
// kernel: tpu_custom_call.1
= control target key start
LH: loop header
LB: loop body
LE: loop exit
PB: predicated region body
PF: predicated region fallthrough
CT: control target
= control target key end

     0   :  { %vm19_vm0 = vcmask 7168   ;;  %v148_v0 = vmov 0.0|0.0   ;;  %v149_v4 = vmov 0.0   ;;  %vm150_vm1 = vmmov 0   ;;  %s195_s1 = inlined_call_operand.vmem [shape: f32[32,1], index: 1, kind: input, shape index: {}]   ;;  %s196_s0 = inlined_call_operand.vmem [shape: f32[8,32], index: 0, kind: input, shape index: {}]   ;;  %s197_s2 = inlined_call_operand.<no memory space> [shape: f32[1,1], index: 2, kind: input, shape index: {}]   ;;  %s198_s3 = inlined_call_operand.vmem [shape: f32[8,1], index: 3, kind: output, shape index: {}]  }
   0x1   :  { %137 = vmatprep.subr.bf16.mxu0 %v148_v0  ;;  %v22_v1 = vld [vmem:[%s195_s1] sm:$0xff]  ;;  %v23_v2 = vld [vmem:[%s195_s1 + $0x8] sm:$0xff]  ;;  %v24_v3 = vld [vmem:[%s195_s1 + $0x10] sm:$0xff]  ;;  %20 = vst.msk [vmem:[#allocation2] sm:$0xff] %vm19_vm0, %v149_v4  ;;  %134 = vmatprep.mubr.msk.f32.mxu0 %vm150_vm1, %v149_v4  ;;  %vm27_vm2 = vcmask 261120   ;;  %v109_v13 = vstv %s197_s2 }
   0x2   :  { %v138_v5 = vpack.c.bf16 %v23_v2, %v22_v1  ;;  %v25_v6 = vld [vmem:[%s195_s1 + $0x18] sm:$0xff]  ;;  %v21_v8 = vld [vmem:[%s196_s0] sm:$0xff] }
   0x3   :  { %v141_v7 = vpack.c.bf16 %v25_v6, %v24_v3 }
   0x4   :  { %139 = vmatpush3.bf16.msra.mxu0 %v138_v5 }
   0x5   :  { %140 = vmatprep.subr.bf16.mxu0 %v148_v0 }
   0x8   :  { %142 = vmatpush3.bf16.msra.mxu0 %v141_v7  ;;  %v26_v9 = vld [vmem:[#allocation2] sm:$0xff] }
   0xb   :  { %135 = vmatmul.mubr.msk.f32.vlgmr.msra.gmra.mrb[0].mxu0 %vm27_vm2, %v21_v8 }
  0xde   :  { %v97_v10 = vpop.f32.mrb[0].mxu0 }
  0xdf   :  { %v101_v11 = vadd.f32 %v97_v10, %v26_v9  ;;  %v136_v12 = vpop.f32.mrb[1].mxu0 }
  0xe1   :  { %103 = vst.msk [vmem:[#allocation2] sm:$0xff] %vm19_vm0, %v101_v11 }
  0xe8   :  { %v107_v14 = vld [vmem:[#allocation2] sm:$0xff] }
  0xe9   :  { %v110_v15 = vadd.f32 %v109_v13, %v107_v14 }
  0xeb   :  { %v111_v16 = vmul.f32 0.5, %v110_v15 }
  0xed   :  { %146 = vtanh.f32 %v111_v16 }
  0xf7   :  { %v147_v17 = vpop.eup %146 }
  0xf8   :  { %v113_v18 = vadd.f32 1.0, %v147_v17 }
  0xfa   :  { %v114_v19 = vmul.f32 0.5, %v113_v18 }
  0xfc   :  { %115 = vst.msk [vmem:[%s198_s3] sm:$0xff] %vm19_vm0, %v114_v19 }

</bundles_post_ra>
